<compile_context>
chip_gen: v7x
topology: tpu7x:2x2x1
jax: 0.10.0
libtpu: 0.0.40
codegen_flags: <defaults>
</compile_context>

<pallas_src>
import functools

import jax
import jax.numpy as jnp
from jax import lax
from jax.experimental import pallas as pl
from jax.experimental.pallas import tpu as pltpu


def _sep_conv_matmul_kernel(cols_ref, wf_ref, o_ref):
    # cols_ref: (K*K*C, tn)   im2col patches, lane-dense (built in the wrapper)
    # wf_ref  : (Cout, K*K*C) fused depthwise*pointwise weights
    # o_ref   : (Cout, tn)    lane-dense output tile (tn multiple of 128, or full N)
    o_ref[...] = jnp.dot(
        wf_ref[...], cols_ref[...], preferred_element_type=jnp.float32
    ).astype(o_ref.dtype)


def fuse_separable_weights(dw, pw):
    """One-time weight fusion (call at module init, not per forward).

    dw: (K, K, C)  depthwise weights (dw[:, :, c] is channel c's KxK filter)
    pw: (C, Cout)  pointwise 1x1 weights
    Returns wf: (Cout, C*K*K) with feature index c*K*K + kh*K + kw, matching
    the channel-major ordering produced by lax.conv_general_dilated_patches.
    """
    K = dw.shape[0]
    C, Cout = pw.shape
    wf = dw[:, :, :, None] * pw[None, None, :, :]                 # (K, K, C, Cout)
    return jnp.transpose(wf, (3, 2, 0, 1)).reshape(Cout, C * K * K)


@functools.partial(jax.jit, static_argnames=("kernel_size", "stride", "padding"))
def conv2d_separable(x_nchw, wf, *, kernel_size, stride=1, padding=0):
    """Pallas depthwise-separable conv forward (NCHW in, NCHW out).

    x_nchw: (B, C, H, W) float32
    wf    : (Cout, C*K*K) pre-fused weights from fuse_separable_weights().
    """
    B, C, H, W = x_nchw.shape
    K = kernel_size
    Ho = (H + 2 * padding - K) // stride + 1
    Wo = (W + 2 * padding - K) // stride + 1
    Cout = wf.shape[0]
    KKC = C * K * K
    N = B * Ho * Wo

    # im2col in the wrapper (cheap XLA op, ~72 KB of HBM traffic at this size):
    # patches[b, c*K*K + kh*K + kw, ho, wo] = x_pad[b, c, ho*stride+kh, wo*stride+kw]
    patches = lax.conv_general_dilated_patches(
        x_nchw,
        filter_shape=(K, K),
        window_strides=(stride, stride),
        padding=[(padding, padding), (padding, padding)],
        dimension_numbers=("NCHW", "OIHW", "NCHW"),
    )                                                             # (B, K*K*C, Ho, Wo)
    # Lane-dense contraction layout with batch folded onto the lane axis.
    cols = jnp.transpose(patches, (1, 0, 2, 3)).reshape(KKC, N)   # (K*K*C, B*Ho*Wo)

    # Tile the lane (N) axis only when it is large; tiles are multiples of 128
    # so stores stay unmasked vst. At the demo size this is a single grid step
    # (grid overhead ~0.35 us/step dominates otherwise).
    tn = N
    if N > 2048:
        for cand in (2048, 1024, 512, 256, 128):
            if N % cand == 0:
                tn = cand
                break
    # TODO(synk): for production channel counts also tile K*K*C (with an f32
    # accumulator / "arbitrary" reduction axis) and size tiles against the
    # per-generation VMEM budget (64 MiB on v7x vs 128 MiB on v5e/v6e).

    y = pl.pallas_call(
        _sep_conv_matmul_kernel,
        out_shape=jax.ShapeDtypeStruct((Cout, N), x_nchw.dtype),
        grid=(N // tn,),
        in_specs=[
            pl.BlockSpec((KKC, tn), lambda n: (0, n)),
            pl.BlockSpec((Cout, KKC), lambda n: (0, 0)),
        ],
        out_specs=pl.BlockSpec((Cout, tn), lambda n: (0, n)),
        compiler_params=pltpu.CompilerParams(
            # Only meaningful once N is actually tiled (large frames); at the
            # demo size there is exactly one step, so no megacore split cost.
            dimension_semantics=("parallel",),
        ),
    )(cols, wf)

    # (Cout, B, Ho, Wo) -> (B, Cout, Ho, Wo): tiny wrapper transpose (~16 KB).
    return jnp.transpose(y.reshape(Cout, B, Ho, Wo), (1, 0, 2, 3))


def _reference(x_nchw, dw, pw, *, stride, padding):
    """Plain-JAX reference mirroring torch Conv2d semantics (cross-correlation)."""
    C = x_nchw.shape[1]
    dw_oihw = jnp.transpose(dw, (2, 0, 1))[:, None, :, :]         # (C, 1, K, K)
    y = lax.conv_general_dilated(
        x_nchw, dw_oihw, (stride, stride), [(padding, padding)] * 2,
        dimension_numbers=("NCHW", "OIHW", "NCHW"), feature_group_count=C)
    pw_oihw = jnp.transpose(pw, (1, 0))[:, :, None, None]         # (Cout, C, 1, 1)
    return lax.conv_general_dilated(
        y, pw_oihw, (1, 1), [(0, 0)] * 2,
        dimension_numbers=("NCHW", "OIHW", "NCHW"))


if __name__ == "__main__":
    # Module config (small, consistent with the PyTorch module's __init__).
    in_channels, out_channels = 4, 8
    kernel_size, stride, padding = 3, 1, 1
    B, H, W = 2, 16, 16

    key = jax.random.PRNGKey(0)
    kx, kd, kp = jax.random.split(key, 3)

    x = jax.random.normal(kx, (B, in_channels, H, W), dtype=jnp.float32)
    # Depthwise weight ~ torch Conv2d weight (C, 1, K, K) -> (K, K, C)
    dw = 0.1 * jax.random.normal(
        kd, (kernel_size, kernel_size, in_channels), dtype=jnp.float32)
    # Pointwise weight ~ torch Conv2d weight (Cout, C, 1, 1) -> (C, Cout)
    pw = 0.1 * jax.random.normal(
        kp, (in_channels, out_channels), dtype=jnp.float32)

    # Weight fusion done once, outside the per-forward path.
    wf = fuse_separable_weights(dw, pw)

    out = conv2d_separable(
        x, wf, kernel_size=kernel_size, stride=stride, padding=padding)
    out = jax.block_until_ready(out)

    ref = _reference(x, dw, pw, stride=stride, padding=padding)
    assert out.shape == (B, out_channels, H, W), out.shape
    assert jnp.allclose(out, ref, atol=1e-4, rtol=1e-4), "mismatch vs reference"

    print("KERNEL_OK")
</pallas_src>

<mosaic_0001>
module attributes {stable_mosaic.version = 11 : i64} {
  func.func @_sep_conv_matmul_kernel(%arg0: i32, %arg1: memref<36x512xf32, #tpu.memory_space<vmem>>, %arg2: memref<8x36xf32, #tpu.memory_space<vmem>>, %arg3: memref<8x512xf32, #tpu.memory_space<vmem>>) attributes {dimension_semantics = [#tpu.dimension_semantics<parallel>], iteration_bounds = array<i64: 1>, scalar_prefetch = 0 : i64, scratch_operands = 0 : i64, tpu.core_type = #tpu.core_type<tc>, window_params = [{transform_indices = @transform_0, window_bounds = array<i64: 36, 512>}, {pipeline_mode = #tpu.pipeline_mode<synchronous>, transform_indices = @transform_1, window_bounds = array<i64: 8, 36>}, {transform_indices = @transform_2, window_bounds = array<i64: 8, 512>}]} {
    %c0 = arith.constant 0 : index
    %c0_0 = arith.constant 0 : index
    %0 = vector.load %arg2[%c0, %c0_0] : memref<8x36xf32, #tpu.memory_space<vmem>>, vector<8x36xf32>
    %c0_1 = arith.constant 0 : index
    %c0_2 = arith.constant 0 : index
    %1 = vector.load %arg1[%c0_1, %c0_2] : memref<36x512xf32, #tpu.memory_space<vmem>>, vector<36x512xf32>
    %cst = arith.constant dense<0.000000e+00> : vector<8x512xf32>
    %2 = tpu.matmul %0, %1, %cst {dimension_numbers = #tpu.dot_dimension_numbers<[1], [0], [0], [1], [0, 0, 1, 1], [], []>} : vector<8x36xf32>, vector<36x512xf32>, vector<8x512xf32> -> vector<8x512xf32>
    %c0_3 = arith.constant 0 : index
    %c0_4 = arith.constant 0 : index
    %3 = vector.load %arg3[%c0_3, %c0_4] : memref<8x512xf32, #tpu.memory_space<vmem>>, vector<8x512xf32>
    tpu.vector_store %arg3[%c0_3, %c0_4], %2 {strides = array<i32>} : memref<8x512xf32, #tpu.memory_space<vmem>>, vector<8x512xf32>,
    return
  }
  func.func @transform_0(%arg0: i32) -> (i32, i32) {
    %c0_i32 = arith.constant 0 : i32
    %c0_i32_0 = arith.constant 0 : i32
    return %c0_i32, %arg0 : i32, i32
  }
  func.func @transform_1(%arg0: i32) -> (i32, i32) {
    %c0_i32 = arith.constant 0 : i32
    %c0_i32_0 = arith.constant 0 : i32
    %c0_i32_1 = arith.constant 0 : i32
    return %c0_i32, %c0_i32_0 : i32, i32
  }
  func.func @transform_2(%arg0: i32) -> (i32, i32) {
    %c0_i32 = arith.constant 0 : i32
    %c0_i32_0 = arith.constant 0 : i32
    return %c0_i32, %arg0 : i32, i32
  }
}

</mosaic_0001>

<bundles_post_ra>
// kernel: conv2d_separable.1
= control target key start
LH: loop header
LB: loop body
LE: loop exit
PB: predicated region body
PF: predicated region fallthrough
CT: control target
= control target key end

     0   :  { %v222_v3 = vmov 0.0   ;;  %vm36_vm0 = vcmask 1043456   ;;  %vm32_vm1 = vcmask 293888   ;;  %s313_s0 = inlined_call_operand.vmem [shape: f32[36,512], index: 0, kind: input, shape index: {}]   ;;  %s314_s1 = inlined_call_operand.vmem [shape: f32[8,36], index: 1, kind: input, shape index: {}]   ;;  %s315_s2 = inlined_call_operand.vmem [shape: f32[8,512], index: 2, kind: output, shape index: {}]  }
   0x1   :  { %v13_v0 = vld [vmem:[%s313_s0 + $0x8] sm:$0xff]  ;;  %v15_v2 = vld [vmem:[%s313_s0 + $0x18] sm:$0xff]  ;;  %113 = vmatprep.mubr.f32.mxu0 %v222_v3  ;;  %184 = vmatprep.mubr.f32.mxu1 %v222_v3  ;;  %v12_v6 = vld [vmem:[%s313_s0] sm:$0xff] }
   0x2   :  { %v17_v1 = vld [vmem:[%s313_s0 + $0x28] sm:$0xff]  ;;  %v19_v5 = vld [vmem:[%s313_s0 + $0x38] sm:$0xff]  ;;  %v16_v7 = vld [vmem:[%s313_s0 + $0x20] sm:$0xff] }
   0x3   :  { %v205_v4 = vpack.c.bf16 %v17_v1, %v13_v0  ;;  %v213_v8 = vpack.c.bf16 %v19_v5, %v15_v2  ;;  %v207_v9 = vpack.c.bf16 %v16_v7, %v12_v6  ;;  %v14_v10 = vld [vmem:[%s313_s0 + $0x10] sm:$0xff]  ;;  %v21_v12 = vld [vmem:[%s313_s0 + $0x48] sm:$0xff]  ;;  %v23_v15 = vld [vmem:[%s313_s0 + $0x58] sm:$0xff] }
   0x4   :  { %v18_v11 = vld [vmem:[%s313_s0 + $0x30] sm:$0xff]  ;;  %v25_v14 = vld [vmem:[%s313_s0 + $0x68] sm:$0xff]  ;;  %v27_v16 = vld [vmem:[%s313_s0 + $0x78] sm:$0xff] }
   0x5   :  { %206 = vmatprep.subr.bf16.mxu0 %v205_v4  ;;  %v215_v13 = vpack.c.bf16 %v18_v11, %v14_v10  ;;  %214 = vmatprep.subr.bf16.mxu1 %v213_v8  ;;  %v209_v17 = vpack.c.bf16 %v25_v14, %v21_v12  ;;  %v217_v18 = vpack.c.bf16 %v27_v16, %v23_v15  ;;  %v20_v19 = vld [vmem:[%s313_s0 + $0x40] sm:$0xff]  ;;  %v22_v21 = vld [vmem:[%s313_s0 + $0x50] sm:$0xff]  ;;  %v29_v25 = vld [vmem:[%s313_s0 + $0x88] sm:$0xf] }
   0x6   :  { %208 = vmatpush1.bf16.msra.mxu0 %v207_v9  ;;  %v24_v20 = vld [vmem:[%s313_s0 + $0x60] sm:$0xff]  ;;  %v26_v23 = vld [vmem:[%s313_s0 + $0x70] sm:$0xff]  ;;  %v31_v26 = vld [vmem:[%s313_s0 + $0x98] sm:$0xf] }
   0x7   :  { %216 = vmatpush1.bf16.msra.mxu1 %v215_v13  ;;  %v211_v22 = vpack.c.bf16 %v24_v20, %v20_v19  ;;  %210 = vmatprep.subr.bf16.mxu0 %v209_v17  ;;  %v219_v24 = vpack.c.bf16 %v26_v23, %v22_v21  ;;  %v28_v27 = vld [vmem:[%s313_s0 + $0x80] sm:$0xf]  ;;  %v30_v28 = vld [vmem:[%s313_s0 + $0x90] sm:$0xf] }
   0x8   :  { %218 = vmatprep.subr.bf16.mxu1 %v217_v18  ;;  %v11_v29 = vld [vmem:[%s314_s1] sm:$0xff] }
   0xa   :  { %212 = vmatpush1.bf16.msra.mxu0 %v211_v22 }
   0xb   :  { %220 = vmatpush1.bf16.msra.mxu1 %v219_v24  ;;  %199 = vmatprep.subr.msk.mxu0 %vm36_vm0, %v29_v25 }
   0xc   :  { %202 = vmatprep.subr.msk.mxu1 %vm36_vm0, %v31_v26 }
   0xe   :  { %200 = vmatpush1.msk.msra.mxu0 %vm36_vm0, %v28_v27 }
   0xf   :  { %203 = vmatpush1.msk.msra.mxu1 %vm36_vm0, %v30_v28  ;;  %201 = vmatmul.mubr.msk.f32.vlgmr.msra.gmra.mrb[0].mxu0 %vm32_vm1, %v11_v29 }
  0x10   :  { %204 = vmatmul.mubr.msk.f32.vlgmr.msra.gmra.mrb[0].mxu1 %vm32_vm1, %v11_v29 }
  0xe2   :  { %v115_v30 = vpop.f32.mrb[0].mxu0 }
  0xe3   :  { %191 = vst [vmem:[%s315_s2] sm:$0xff] %v115_v30  ;;  %v186_v31 = vpop.f32.mrb[0].mxu1  ;;  %v117_v32 = vpop.f32.mrb[1].mxu0 }
  0xe4   :  { %193 = vst [vmem:[%s315_s2 + $0x10] sm:$0xff] %v186_v31  ;;  %192 = vst [vmem:[%s315_s2 + $0x8] sm:$0xff] %v117_v32  ;;  %v188_v33 = vpop.f32.mrb[1].mxu1 }
  0xe5   :  { %194 = vst [vmem:[%s315_s2 + $0x18] sm:$0xff] %v188_v33 }

</bundles_post_ra>
